<compile_context>
chip_gen: v5e
topology: v5e:2x2
jax: 0.10.0
libtpu: 0.0.40
codegen_flags: <defaults>
</compile_context>

<pallas_src>
import math

import jax
import jax.numpy as jnp
from jax.experimental import pallas as pl
from jax.experimental.pallas import tpu as pltpu


def _detr_kernel(src_ref, wproj_ref, bproj_ref, q_ref,
                 w_head_ref, b_head_ref,
                 w2_ref, b2_ref, w3_ref, b3_ref,
                 out_ref):
    # src_ref block: (1, C, HW) -> (C, HW); channels on sublanes, HW on lanes.
    src = src_ref[0]

    # ---- input_proj: 1x1 conv as (D, C) @ (C, HW); memory kept transposed.
    memT = (jnp.dot(wproj_ref[...], src, preferred_element_type=jnp.float32)
            + bproj_ref[...])                                     # (D, HW) f32
    memT_bf = memT.astype(jnp.bfloat16)

    # ---- transformer stand-in: single cross-attention layer ----------------
    q = q_ref[...]                                                # (Q, D) bf16
    d = q.shape[-1]
    scale = jnp.float32(1.0 / math.sqrt(d))
    # scores = q @ memT  (memT already (D, HW): no transpose needed)
    scores = jnp.dot(q, memT_bf, preferred_element_type=jnp.float32) * scale
    scores = scores - jnp.max(scores, axis=-1, keepdims=True)     # f32 softmax
    p = jnp.exp(scores)
    inv_denom = pl.reciprocal(jnp.sum(p, axis=-1, keepdims=True), approx=True)
    attn = p * inv_denom                                          # (Q, HW) f32
    # hs = attn @ mem; contract the HW axes directly (no mem.T materialized).
    hs = jax.lax.dot_general(attn.astype(jnp.bfloat16), memT_bf,
                             dimension_numbers=(((1,), (1,)), ((), ())),
                             preferred_element_type=jnp.float32)  # (Q, D) f32

    # ---- fused head: [bbox_embed.layers[0] | class_embed] in one matmul ----
    head = (jnp.dot(hs.astype(jnp.bfloat16), w_head_ref[...],
                    preferred_element_type=jnp.float32)
            + b_head_ref[...])                                    # (Q, D+NC1)
    h1 = jnp.maximum(head[:, :d], 0.0)                            # bbox layer 1
    logits = head[:, d:]                                          # class logits

    # ---- remaining bbox_embed layers + sigmoid ------------------------------
    h2 = jnp.maximum(jnp.dot(h1.astype(jnp.bfloat16), w2_ref[...],
                             preferred_element_type=jnp.float32) + b2_ref[...],
                     0.0)
    box = jax.nn.sigmoid(jnp.dot(h2.astype(jnp.bfloat16), w3_ref[...],
                                 preferred_element_type=jnp.float32)
                         + b3_ref[...])                           # (Q, 4) f32

    # Single fused output store: [logits | boxes].
    out_ref[0] = jnp.concatenate([logits, box], axis=-1).astype(out_ref.dtype)


def detr_forward(src_nchw, mask, params):
    """src_nchw: (B, C, H, W) backbone feature map (PyTorch NCHW convention).
    mask: (B, H, W) padding mask — only consumed by the external transformer,
    unused by the stand-in (kept in the signature for parity)."""
    del mask  # TODO(synk): padding mask is only used inside the external transformer.

    B, C, H, W = src_nchw.shape
    HW = H * W
    Q, D = params["query_embed"].shape
    NC1 = params["bc"].shape[-1]

    bf16 = jnp.bfloat16
    # NCHW -> (B, C, HW): pure reshape (contiguous), no HBM transpose.
    # TODO(synk): in production the backbone should emit bf16 directly so this
    # cast fuses into its epilogue instead of a separate HBM pass.
    src_flat = src_nchw.reshape(B, C, HW).astype(bf16)

    # Fuse class_embed with bbox_embed.layers[0] (both consume hs).
    w_head = jnp.concatenate([params["w1"], params["wc"]], axis=1).astype(bf16)
    b_head = jnp.concatenate([params["b1"], params["bc"]], axis=1)

    def full(shape):
        return pl.BlockSpec(shape, lambda b: (0,) * len(shape))

    in_specs = [
        pl.BlockSpec((1, C, HW), lambda b: (b, 0, 0)),   # src (lane-dense on HW)
        full((D, C)), full((D, 1)),                      # input_proj W (pre-transposed), b
        full((Q, D)),                                    # query_embed.weight
        full((D, D + NC1)), full((1, D + NC1)),          # fused [bbox_l1 | class] head
        full((D, D)), full((1, D)),                      # bbox_embed.layers[1]
        full((D, 4)), full((1, 4)),                      # bbox_embed.layers[2]
    ]
    out_specs = pl.BlockSpec((1, Q, NC1 + 4), lambda b: (b, 0, 0))
    out_shape = jax.ShapeDtypeStruct((B, Q, NC1 + 4), jnp.float32)

    # grid=(B,) parallel: batch elements are independent (keeps both v7x
    # TensorCores busy for B>=2; per-step work is trivial at toy sizes).
    fused = pl.pallas_call(
        _detr_kernel,
        grid=(B,),
        in_specs=in_specs,
        out_specs=out_specs,
        out_shape=out_shape,
        compiler_params=pltpu.CompilerParams(
            dimension_semantics=("parallel",)),
    )(src_flat,
      params["w_proj_t"].astype(bf16), params["b_proj"],
      params["query_embed"].astype(bf16),
      w_head, b_head,
      params["w2"].astype(bf16), params["b2"],
      params["w3"].astype(bf16), params["b3"])

    # hs would be stacked over decoder layers in the real model; the stand-in
    # has a single layer so this is already the [-1] slice.
    return {"pred_logits": fused[..., :NC1], "pred_boxes": fused[..., NC1:]}


def init_params(key, num_channels, hidden_dim, num_classes, num_queries):
    ks = jax.random.split(key, 8)
    s = 0.02
    p = {
        # input_proj: Conv2d(num_channels, hidden_dim, kernel_size=1)
        # PyTorch weight is (D, C, 1, 1); stored here pre-transposed as (D, C)
        # so the kernel computes memT = W @ src without any transpose.
        "w_proj_t": jax.random.normal(ks[0], (hidden_dim, num_channels), jnp.float32) * s,
        "b_proj": jnp.zeros((hidden_dim, 1), jnp.float32),
        # query_embed: Embedding(num_queries, hidden_dim)
        "query_embed": jax.random.normal(ks[1], (num_queries, hidden_dim), jnp.float32) * s,
        # class_embed: Linear(hidden_dim, num_classes + 1)
        "wc": jax.random.normal(ks[2], (hidden_dim, num_classes + 1), jnp.float32) * s,
        "bc": jnp.zeros((1, num_classes + 1), jnp.float32),
        # bbox_embed: MLP(hidden_dim, hidden_dim, 4, num_layers=3)
        "w1": jax.random.normal(ks[3], (hidden_dim, hidden_dim), jnp.float32) * s,
        "b1": jnp.zeros((1, hidden_dim), jnp.float32),
        "w2": jax.random.normal(ks[4], (hidden_dim, hidden_dim), jnp.float32) * s,
        "b2": jnp.zeros((1, hidden_dim), jnp.float32),
        "w3": jax.random.normal(ks[5], (hidden_dim, 4), jnp.float32) * s,
        "b3": jnp.zeros((1, 4), jnp.float32),
    }
    return p


if __name__ == "__main__":
    B, C, H, W = 2, 4, 16, 16        # backbone.num_channels = 4
    hidden_dim = 32                  # transformer.d_model
    num_classes = 5
    num_queries = 8

    key = jax.random.PRNGKey(0)
    k_src, k_params = jax.random.split(key)

    src = jax.random.normal(k_src, (B, C, H, W), jnp.float32)   # backbone feature map, NCHW
    mask = jnp.zeros((B, H, W), jnp.bool_)                      # no padded pixels
    params = init_params(k_params, C, hidden_dim, num_classes, num_queries)

    out = detr_forward(src, mask, params)
    jax.block_until_ready(out)

    assert out["pred_logits"].shape == (B, num_queries, num_classes + 1)
    assert out["pred_boxes"].shape == (B, num_queries, 4)
    assert bool(jnp.all((out["pred_boxes"] >= 0.0) & (out["pred_boxes"] <= 1.0)))
    print("KERNEL_OK")
</pallas_src>

<mosaic_0001>
module attributes {stable_mosaic.version = 11 : i64} {
  func.func @_detr_kernel(%arg0: i32, %arg1: memref<1x4x256xbf16, #tpu.memory_space<vmem>>, %arg2: memref<32x4xbf16, #tpu.memory_space<vmem>>, %arg3: memref<32x1xf32, #tpu.memory_space<vmem>>, %arg4: memref<8x32xbf16, #tpu.memory_space<vmem>>, %arg5: memref<32x38xbf16, #tpu.memory_space<vmem>>, %arg6: memref<1x38xf32, #tpu.memory_space<vmem>>, %arg7: memref<32x32xbf16, #tpu.memory_space<vmem>>, %arg8: memref<1x32xf32, #tpu.memory_space<vmem>>, %arg9: memref<32x4xbf16, #tpu.memory_space<vmem>>, %arg10: memref<1x4xf32, #tpu.memory_space<vmem>>, %arg11: memref<1x8x10xf32, #tpu.memory_space<vmem>>) attributes {dimension_semantics = [#tpu.dimension_semantics<parallel>], iteration_bounds = array<i64: 2>, scalar_prefetch = 0 : i64, scratch_operands = 0 : i64, tpu.core_type = #tpu.core_type<tc>, window_params = [{transform_indices = @transform_0, window_bounds = array<i64: 1, 4, 256>}, {pipeline_mode = #tpu.pipeline_mode<synchronous>, transform_indices = @transform_1, window_bounds = array<i64: 32, 4>}, {pipeline_mode = #tpu.pipeline_mode<synchronous>, transform_indices = @transform_2, window_bounds = array<i64: 32, 1>}, {pipeline_mode = #tpu.pipeline_mode<synchronous>, transform_indices = @transform_3, window_bounds = array<i64: 8, 32>}, {pipeline_mode = #tpu.pipeline_mode<synchronous>, transform_indices = @transform_4, window_bounds = array<i64: 32, 38>}, {pipeline_mode = #tpu.pipeline_mode<synchronous>, transform_indices = @transform_5, window_bounds = array<i64: 1, 38>}, {pipeline_mode = #tpu.pipeline_mode<synchronous>, transform_indices = @transform_6, window_bounds = array<i64: 32, 32>}, {pipeline_mode = #tpu.pipeline_mode<synchronous>, transform_indices = @transform_7, window_bounds = array<i64: 1, 32>}, {pipeline_mode = #tpu.pipeline_mode<synchronous>, transform_indices = @transform_8, window_bounds = array<i64: 32, 4>}, {pipeline_mode = #tpu.pipeline_mode<synchronous>, transform_indices = @transform_9, window_bounds = array<i64: 1, 4>}, {transform_indices = @transform_10, window_bounds = array<i64: 1, 8, 10>}]} {
    %c0 = arith.constant 0 : index
    %c0_0 = arith.constant 0 : index
    %c0_1 = arith.constant 0 : index
    %0 = vector.load %arg1[%c0, %c0_0, %c0_1] : memref<1x4x256xbf16, #tpu.memory_space<vmem>>, vector<1x4x256xbf16>
    %1 = vector.shape_cast %0 : vector<1x4x256xbf16> to vector<4x256xbf16>
    %c0_2 = arith.constant 0 : index
    %c0_3 = arith.constant 0 : index
    %2 = vector.load %arg2[%c0_2, %c0_3] : memref<32x4xbf16, #tpu.memory_space<vmem>>, vector<32x4xbf16>
    %cst = arith.constant dense<0.000000e+00> : vector<32x256xf32>
    %3 = tpu.matmul %2, %1, %cst {dimension_numbers = #tpu.dot_dimension_numbers<[1], [0], [0], [1], [0, 0, 1, 1], [], []>} : vector<32x4xbf16>, vector<4x256xbf16>, vector<32x256xf32> -> vector<32x256xf32>
    %c0_4 = arith.constant 0 : index
    %c0_5 = arith.constant 0 : index
    %4 = vector.load %arg3[%c0_4, %c0_5] : memref<32x1xf32, #tpu.memory_space<vmem>>, vector<32x1xf32>
    %5 = vector.broadcast %4 : vector<32x1xf32> to vector<32x256xf32>
    %6 = arith.addf %3, %5 : vector<32x256xf32>
    %7 = arith.truncf %6 : vector<32x256xf32> to vector<32x256xbf16>
    %c0_6 = arith.constant 0 : index
    %c0_7 = arith.constant 0 : index
    %8 = vector.load %arg4[%c0_6, %c0_7] : memref<8x32xbf16, #tpu.memory_space<vmem>>, vector<8x32xbf16>
    %cst_8 = arith.constant dense<0.000000e+00> : vector<8x256xf32>
    %9 = tpu.matmul %8, %7, %cst_8 {dimension_numbers = #tpu.dot_dimension_numbers<[1], [0], [0], [1], [0, 0, 1, 1], [], []>} : vector<8x32xbf16>, vector<32x256xbf16>, vector<8x256xf32> -> vector<8x256xf32>
    %cst_9 = arith.constant 0.176776692 : f32
    %10 = vector.broadcast %cst_9 : f32 to vector<8x256xf32>
    %11 = arith.mulf %9, %10 : vector<8x256xf32>
    %cst_10 = arith.constant dense<0xFF800000> : vector<8xf32>
    %12 = vector.multi_reduction <maximumf>, %11, %cst_10 [1] : vector<8x256xf32> to vector<8xf32>
    %13 = vector.shape_cast %12 : vector<8xf32> to vector<8x1xf32>
    %14 = vector.broadcast %13 : vector<8x1xf32> to vector<8x256xf32>
    %15 = arith.subf %11, %14 : vector<8x256xf32>
    %16 = math.exp %15 : vector<8x256xf32>
    %cst_11 = arith.constant dense<0.000000e+00> : vector<8xf32>
    %17 = vector.multi_reduction <add>, %16, %cst_11 [1] : vector<8x256xf32> to vector<8xf32>
    %18 = vector.shape_cast %17 : vector<8xf32> to vector<8x1xf32>
    %19 = tpu.reciprocal %18 {approx = true} : vector<8x1xf32> -> vector<8x1xf32>
    %20 = vector.broadcast %19 : vector<8x1xf32> to vector<8x256xf32>
    %21 = arith.mulf %16, %20 : vector<8x256xf32>
    %22 = arith.truncf %21 : vector<8x256xf32> to vector<8x256xbf16>
    %cst_12 = arith.constant dense<0.000000e+00> : vector<8x32xf32>
    %23 = tpu.matmul %22, %7, %cst_12 {dimension_numbers = #tpu.dot_dimension_numbers<[1], [1], [0], [0], [0, 0, 1, 0], [], []>} : vector<8x256xbf16>, vector<32x256xbf16>, vector<8x32xf32> -> vector<8x32xf32>
    %24 = arith.truncf %23 : vector<8x32xf32> to vector<8x32xbf16>
    %c0_13 = arith.constant 0 : index
    %c0_14 = arith.constant 0 : index
    %25 = vector.load %arg5[%c0_13, %c0_14] : memref<32x38xbf16, #tpu.memory_space<vmem>>, vector<32x38xbf16>
    %cst_15 = arith.constant dense<0.000000e+00> : vector<8x38xf32>
    %26 = tpu.matmul %24, %25, %cst_15 {dimension_numbers = #tpu.dot_dimension_numbers<[1], [0], [0], [1], [0, 0, 1, 1], [], []>} : vector<8x32xbf16>, vector<32x38xbf16>, vector<8x38xf32> -> vector<8x38xf32>
    %c0_16 = arith.constant 0 : index
    %c0_17 = arith.constant 0 : index
    %27 = vector.load %arg6[%c0_16, %c0_17] : memref<1x38xf32, #tpu.memory_space<vmem>>, vector<1x38xf32>
    %28 = vector.broadcast %27 : vector<1x38xf32> to vector<8x38xf32>
    %29 = arith.addf %26, %28 : vector<8x38xf32>
    %30 = vector.extract_strided_slice %29 {offsets = [0, 0], sizes = [8, 32], strides = [1, 1]} : vector<8x38xf32> to vector<8x32xf32>
    %cst_18 = arith.constant 0.000000e+00 : f32
    %31 = vector.broadcast %cst_18 : f32 to vector<8x32xf32>
    %32 = arith.maximumf %30, %31 : vector<8x32xf32>
    %33 = vector.extract_strided_slice %29 {offsets = [0, 32], sizes = [8, 6], strides = [1, 1]} : vector<8x38xf32> to vector<8x6xf32>
    %34 = arith.truncf %32 : vector<8x32xf32> to vector<8x32xbf16>
    %c0_19 = arith.constant 0 : index
    %c0_20 = arith.constant 0 : index
    %35 = vector.load %arg7[%c0_19, %c0_20] : memref<32x32xbf16, #tpu.memory_space<vmem>>, vector<32x32xbf16>
    %cst_21 = arith.constant dense<0.000000e+00> : vector<8x32xf32>
    %36 = tpu.matmul %34, %35, %cst_21 {dimension_numbers = #tpu.dot_dimension_numbers<[1], [0], [0], [1], [0, 0, 1, 1], [], []>} : vector<8x32xbf16>, vector<32x32xbf16>, vector<8x32xf32> -> vector<8x32xf32>
    %c0_22 = arith.constant 0 : index
    %c0_23 = arith.constant 0 : index
    %37 = vector.load %arg8[%c0_22, %c0_23] : memref<1x32xf32, #tpu.memory_space<vmem>>, vector<1x32xf32>
    %38 = vector.broadcast %37 : vector<1x32xf32> to vector<8x32xf32>
    %39 = arith.addf %36, %38 : vector<8x32xf32>
    %cst_24 = arith.constant 0.000000e+00 : f32
    %40 = vector.broadcast %cst_24 : f32 to vector<8x32xf32>
    %41 = arith.maximumf %39, %40 : vector<8x32xf32>
    %42 = arith.truncf %41 : vector<8x32xf32> to vector<8x32xbf16>
    %c0_25 = arith.constant 0 : index
    %c0_26 = arith.constant 0 : index
    %43 = vector.load %arg9[%c0_25, %c0_26] : memref<32x4xbf16, #tpu.memory_space<vmem>>, vector<32x4xbf16>
    %cst_27 = arith.constant dense<0.000000e+00> : vector<8x4xf32>
    %44 = tpu.matmul %42, %43, %cst_27 {dimension_numbers = #tpu.dot_dimension_numbers<[1], [0], [0], [1], [0, 0, 1, 1], [], []>} : vector<8x32xbf16>, vector<32x4xbf16>, vector<8x4xf32> -> vector<8x4xf32>
    %c0_28 = arith.constant 0 : index
    %c0_29 = arith.constant 0 : index
    %45 = vector.load %arg10[%c0_28, %c0_29] : memref<1x4xf32, #tpu.memory_space<vmem>>, vector<1x4xf32>
    %46 = vector.broadcast %45 : vector<1x4xf32> to vector<8x4xf32>
    %47 = arith.addf %44, %46 : vector<8x4xf32>
    %48 = arith.negf %47 : vector<8x4xf32>
    %49 = math.exp %48 : vector<8x4xf32>
    %cst_30 = arith.constant 1.000000e+00 : f32
    %50 = vector.broadcast %cst_30 : f32 to vector<8x4xf32>
    %51 = arith.addf %50, %49 : vector<8x4xf32>
    %52 = arith.divf %50, %51 : vector<8x4xf32>
    %53 = tpu.concatenate %33, %52 in 1 : vector<8x6xf32>, vector<8x4xf32> -> vector<8x10xf32>
    %c0_31 = arith.constant 0 : index
    %c0_32 = arith.constant 0 : index
    %c0_33 = arith.constant 0 : index
    %54 = vector.load %arg11[%c0_31, %c0_32, %c0_33] : memref<1x8x10xf32, #tpu.memory_space<vmem>>, vector<1x8x10xf32>
    %55 = vector.shape_cast %54 : vector<1x8x10xf32> to vector<8x10xf32>
    %56 = vector.shape_cast %53 : vector<8x10xf32> to vector<1x8x10xf32>
    tpu.vector_store %arg11[%c0_31, %c0_32, %c0_33], %56 {strides = array<i32>} : memref<1x8x10xf32, #tpu.memory_space<vmem>>, vector<1x8x10xf32>,
    return
  }
  func.func @transform_0(%arg0: i32) -> (i32, i32, i32) {
    %c0_i32 = arith.constant 0 : i32
    %c0_i32_0 = arith.constant 0 : i32
    %c0_i32_1 = arith.constant 0 : i32
    return %arg0, %c0_i32, %c0_i32_0 : i32, i32, i32
  }
  func.func @transform_1(%arg0: i32) -> (i32, i32) {
    %c0_i32 = arith.constant 0 : i32
    %c0_i32_0 = arith.constant 0 : i32
    %c0_i32_1 = arith.constant 0 : i32
    return %c0_i32, %c0_i32_0 : i32, i32
  }
  func.func @transform_2(%arg0: i32) -> (i32, i32) {
    %c0_i32 = arith.constant 0 : i32
    %c0_i32_0 = arith.constant 0 : i32
    %c0_i32_1 = arith.constant 0 : i32
    return %c0_i32, %c0_i32_0 : i32, i32
  }
  func.func @transform_3(%arg0: i32) -> (i32, i32) {
    %c0_i32 = arith.constant 0 : i32
    %c0_i32_0 = arith.constant 0 : i32
    %c0_i32_1 = arith.constant 0 : i32
    return %c0_i32, %c0_i32_0 : i32, i32
  }
  func.func @transform_4(%arg0: i32) -> (i32, i32) {
    %c0_i32 = arith.constant 0 : i32
    %c0_i32_0 = arith.constant 0 : i32
    %c0_i32_1 = arith.constant 0 : i32
    return %c0_i32, %c0_i32_0 : i32, i32
  }
  func.func @transform_5(%arg0: i32) -> (i32, i32) {
    %c0_i32 = arith.constant 0 : i32
    %c0_i32_0 = arith.constant 0 : i32
    %c0_i32_1 = arith.constant 0 : i32
    return %c0_i32, %c0_i32_0 : i32, i32
  }
  func.func @transform_6(%arg0: i32) -> (i32, i32) {
    %c0_i32 = arith.constant 0 : i32
    %c0_i32_0 = arith.constant 0 : i32
    %c0_i32_1 = arith.constant 0 : i32
    return %c0_i32, %c0_i32_0 : i32, i32
  }
  func.func @transform_7(%arg0: i32) -> (i32, i32) {
    %c0_i32 = arith.constant 0 : i32
    %c0_i32_0 = arith.constant 0 : i32
    %c0_i32_1 = arith.constant 0 : i32
    return %c0_i32, %c0_i32_0 : i32, i32
  }
  func.func @transform_8(%arg0: i32) -> (i32, i32) {
    %c0_i32 = arith.constant 0 : i32
    %c0_i32_0 = arith.constant 0 : i32
    %c0_i32_1 = arith.constant 0 : i32
    return %c0_i32, %c0_i32_0 : i32, i32
  }
  func.func @transform_9(%arg0: i32) -> (i32, i32) {
    %c0_i32 = arith.constant 0 : i32
    %c0_i32_0 = arith.constant 0 : i32
    %c0_i32_1 = arith.constant 0 : i32
    return %c0_i32, %c0_i32_0 : i32, i32
  }
  func.func @transform_10(%arg0: i32) -> (i32, i32, i32) {
    %c0_i32 = arith.constant 0 : i32
    %c0_i32_0 = arith.constant 0 : i32
    %c0_i32_1 = arith.constant 0 : i32
    return %arg0, %c0_i32, %c0_i32_0 : i32, i32, i32
  }
}

</mosaic_0001>

<bundles_post_ra>
// kernel: tpu_custom_call.1
= control target key start
LH: loop header
LB: loop body
LE: loop exit
PB: predicated region body
PF: predicated region fallthrough
CT: control target
= control target key end

     0   :  { %15 = vsyncpa [#allocation3], 0  ;;  %s1130_s0 = inlined_call_operand.vmem [shape: bf16[2,4,256], index: 0, kind: input, shape index: {}]   ;;  %s1131_s1 = inlined_call_operand.vmem [shape: bf16[32,4], index: 1, kind: input, shape index: {}]   ;;  %s1132_s2 = inlined_call_operand.vmem [shape: f32[32,1], index: 2, kind: input, shape index: {}]   ;;  %s1133_s3 = inlined_call_operand.vmem [shape: bf16[8,32], index: 3, kind: input, shape index: {}]   ;;  %s1134_s4 = inlined_call_operand.vmem [shape: bf16[32,38], index: 4, kind: input, shape index: {}]   ;;  %s1135_s5 = inlined_call_operand.vmem [shape: f32[1,38], index: 5, kind: input, shape index: {}]   ;;  %s1136_s6 = inlined_call_operand.vmem [shape: bf16[32,32], index: 6, kind: input, shape index: {}]   ;;  %s1137_s7 = inlined_call_operand.vmem [shape: f32[1,32], index: 7, kind: input, shape index: {}]   ;;  %s1138_s8 = inlined_call_operand.vmem [shape: bf16[32,4], index: 8, kind: input, shape index: {}]   ;;  %s1139_s9 = inlined_call_operand.vmem [shape: f32[1,4], index: 9, kind: input, shape index: {}]   ;;  %s1140_s10 = inlined_call_operand.hbm [shape: f32[2,8,10], index: 10, kind: output, shape index: {}]  }
   0x1   :  { %17 = vsyncpa [#allocation3 + $0x1], 0  ;;  %s992_s13 = smov 0   ;;  %s994_s14 = smov 0  }
   0x2   :  { %s996_s15 = smov 0   ;;  %s998_s16 = smov 0  }
   0x3 LB: > { %s1013_s17 = sadd.s32 4294967295, %s932_s16   ;;  %s751_s18 = sadd.s32 4294967294, %s932_s16   ;;  %s932_s16 = sphi %s998_s16, %s1146_s16   ;;  %s928_s15 = sphi %s996_s15, %s1145_s15   ;;  %s924_s14 = sphi %s994_s14, %s1144_s14   ;;  %s920_s13 = sphi %s992_s13, %s1143_s13  }
   0x4   : > { %s1017_s19 = sadd.s32 1, %s932_s16   ;;  %s245_s20 = sadd.s32 1, %s928_s15 }
   0x5   : > { %s242_s21 = ssub.s32 %s932_s16, %s1017_s19  ;;  %p255_p0 = scmp.ne.s32.totalorder %s928_s15, %s924_s14 }
   0x6   : > { %p243_p1 = scmp.eq.s32.totalorder %s242_s21, 0  ;;  %p256_p2 = scmp.eq.s32.totalorder %s1013_s17, 1 }
   0x7   : > { %p261_p3 = scmp.ne.s32.totalorder %s924_s14, %s920_s13  ;;  %p262_p4 = scmp.eq.s32.totalorder %s751_s18, 1 }
   0x8   : > { %s1028_s22 = scalar_select %p243_p1, %s928_s15, %s245_s20  }
   0x9   : > { %p1030_p5 = por %p256_p2, %p255_p0  ;;  %p1034_p6 = por %p262_p4, %p261_p3 }
   0xa   : > { %p754_p7 = scmp.ge.s32.totalorder %s932_s16, 1  ;;  %p315_p8 = scmp.lt.s32.totalorder %s932_s16, 3 }
   0xc   : > { %p316_p9 = pnand %p754_p7, %p315_p8 }
   0xd   : > { %p353_p10 = scmp.lt.s32.totalorder (!%p316_p9), %s1013_s17, 1  ;;  %s935_s12 = smov (!%p316_p9), 96  }
   0xe   : > { %319 = sbr.rel (%p316_p9) target bundleno = 1271 (0x4f7), region = 60  ;;  %s350_s11 = sand.u32 (!%p316_p9), 1, %s924_s14  }
   0xf   : > { %s677_s29 = scalar_lea.sflag (!%p316_p9), [#allocation3], %s350_s11  ;;  %s890_s20 = scalar_lea.hbm (!%p316_p9), %s1140_s10, 16 }
  0x13   : > { %v364_v0 = vld [vmem:[%s1132_s2] sm:$0xff]  ;;  %v934_v1 = vmov 0   ;;  %s354_s27 = scalar_select %p353_p10, %s1013_s17, 1  ;;  %v366_v2 = vld [vmem:[%s1132_s2 + $0x10] sm:$0xff]  ;;  %v365_v4 = vld [vmem:[%s1132_s2 + $0x8] sm:$0xff]  ;;  %vm409_vm0 = vcmask 1041408  }
  0x14   : > { %856 = vset.pattern.permute.xlu1 %v934_v1  ;;  %855 = vset.pattern.permute.xlu0 %v934_v1  ;;  %v367_v5 = vld [vmem:[%s1132_s2 + $0x18] sm:$0xff]  ;;  %v805_v10 = vld [vmem:[%s1131_s1] sm:$0xff]  ;;  %vm402_vm1 = vcmask 31744   ;;  %v806_v11 = vld [vmem:[%s1131_s1 + $0x8] sm:$0xff]  ;;  %vm457_vm2 = vcmask 261120   ;;  %vm672_vm7 = vcmask 48128  }
  0x15   : > { %370 = vperm.xlu1 %856, %v364_v0   ;;  %s804_s30 = sshll.u32 %s354_s27, 2  ;;  %380 = vperm.xlu0 %855, %v366_v2   ;;  %v456_v36 = vld [vmem:[%s1133_s3] sm:$0xf]  ;;  %v808_v52 = vld [vmem:[%s1134_s4 + $0x8] sm:$0xff]  ;;  %vm674_vm8 = vcmask 80896  }
  0x16   : > { %s357_s18 = scalar_lea.vmem %s1130_s0, %s804_s30  ;;  %v807_v53 = vld [vmem:[%s1134_s4] sm:$0xff]  ;;  %v810_v60 = vld [vmem:[%s1136_s6 + $0x8] sm:$0xff]  ;;  %s936_s30 = smov 6  }
  0x17   : > { %v359_v3 = vld [vmem:[%s357_s18] sm:$0xf]  ;;  %s801_s18 = sshll.u32 %s1013_s17, 3 }
  0x18   : > { %399 = vst [vmem:[#allocation1] ss:$4 sm:$0xff] %v359_v3  ;;  %v809_v61 = vld [vmem:[%s1136_s6] sm:$0xff]  ;;  %s687_s25 = scalar_lea.hbm %s1140_s10, %s801_s18 }
  0x19   : > { %s691_s28 = sshll.u32 %s687_s25, 4  ;;  %s692_s28 = int_to_ptr.hbm [resolvable:$true] %s691_s28 }
  0x1d   : > { %375 = vperm.xlu1 %856, %v365_v4   ;;  %385 = vperm.xlu0 %855, %v367_v5   ;;  %v857_v4 = vld [vmem:[%s1135_s5] ss:$0 sm:$0xff] }
  0x1f   : > { %v400_v6 = vld.sshfl [vmem:[#allocation1] sm:$0xff pattern:$0x73625140]  ;;  %v401_v7 = vld.sshfl [vmem:[#allocation1 + $0x8] sm:$0xff pattern:$0x73625140] }
  0x20   : > { %v410_v8 = vsel %vm409_vm0, %v400_v6, 0  ;;  %v412_v9 = vsel %vm409_vm0, %v401_v7, 0 }
  0x21   : > { %421 = vmatpush.bf16.msra.mxu0 %v410_v8  ;;  %440 = vmatpush.bf16.msra.mxu1 %v412_v9 }
  0x24   : > { %766 = vmatmul.msk.bf16.vlgmr.msra.gmra.mxu0 %vm402_vm1, %v805_v10  ;;  %768 = vmatmul.msk.bf16.vlgmr.msra.gmra.mxu1 %vm402_vm1, %v805_v10  ;;  %v812_v10 = vld [vmem:[%s1138_s8 + $0x8] sm:$0xff] }
  0x25   : > { %562 = vmatpush.bf16.msrb.mxu0 %v808_v52  ;;  %600 = vmatpush.bf16.msrb.mxu1 %v810_v60 }
  0x29   : > { %563 = vmatpush.bf16.msrb.mxu0 %v807_v53  ;;  %601 = vmatpush.bf16.msrb.mxu1 %v809_v61 }
  0x34   : > { %767 = vmatmul.msk.bf16.gmra.mxu0 %vm402_vm1, %v806_v11  ;;  %769 = vmatmul.msk.bf16.gmra.mxu1 %vm402_vm1, %v806_v11  ;;  %v811_v11 = vld [vmem:[%s1138_s8] sm:$0xff] }
  0x87   : > { %v371_v16 = vpop.permute.xlu1 %370  ;;  %v381_v17 = vpop.permute.xlu0 %380 }
  0x8f   : > { %v376_v20 = vpop.permute.xlu1 %375  ;;  %v386_v21 = vpop.permute.xlu0 %385 }
  0xa1   : > { %v423_v12 = vpop.f32.mrf.mxu0  ;;  %v442_v13 = vpop.f32.mrf.mxu1 }
  0xa2   : > { %v424_v32 = vadd.f32 %v423_v12, %v371_v16  ;;  %v443_v33 = vadd.f32 %v442_v13, %v371_v16  ;;  %v858_v12 = vld [vmem:[%s1137_s7] ss:$0 sm:$0xff] }
  0xa9   : > { %v425_v14 = vpop.f32.mrf.mxu0  ;;  %v444_v15 = vpop.f32.mrf.mxu1 }
  0xaa   : > { %v426_v28 = vadd.f32 %v425_v14, %v376_v20  ;;  %v445_v29 = vadd.f32 %v444_v15, %v376_v20 }
  0xac   : > { %v452_v34 = vpack.c.bf16 %v426_v28, %v424_v32  ;;  %v453_v35 = vpack.c.bf16 %v445_v29, %v443_v33 }
  0xb1   : > { %v428_v18 = vpop.f32.mrf.mxu0  ;;  %v447_v19 = vpop.f32.mrf.mxu1 }
  0xb2   : > { %v429_v24 = vadd.f32 %v428_v18, %v381_v17  ;;  %v448_v25 = vadd.f32 %v447_v19, %v381_v17  ;;  %v859_v18 = vld [vmem:[%s1139_s9] ss:$0 sm:$0xff] }
  0xb9   : > { %v430_v22 = vpop.f32.mrf.mxu0  ;;  %v449_v23 = vpop.f32.mrf.mxu1 }
  0xba   : > { %v431_v26 = vadd.f32 %v430_v22, %v386_v21  ;;  %v450_v27 = vadd.f32 %v449_v23, %v386_v21 }
  0xbc   : > { %v454_v30 = vpack.c.bf16 %v431_v26, %v429_v24  ;;  %v455_v31 = vpack.c.bf16 %v450_v27, %v448_v25 }
  0xbe   : > { %467 = vmatpush.bf16.msra.mxu2 %v454_v30  ;;  %480 = vmatpush.bf16.msra.mxu3 %v455_v31 }
  0xc2   : > { %468 = vmatpush.bf16.msra.mxu2 %v452_v34  ;;  %481 = vmatpush.bf16.msra.mxu3 %v453_v35 }
  0xc5   : > { %770 = vmatmul.msk.bf16.vlgmr.msra.gmra.mxu2 %vm457_vm2, %v456_v36  ;;  %771 = vmatmul.msk.bf16.vlgmr.msra.gmra.mxu3 %vm457_vm2, %v456_v36 }
  0xc6   : > { %512 = vmatpush.bf16.xpose.msrb.mxu2 %v454_v30  ;;  %525 = vmatpush.bf16.xpose.msrb.mxu3 %v455_v31 }
  0xce   : > { %513 = vmatpush.bf16.xpose.msrb.mxu2 %v452_v34  ;;  %526 = vmatpush.bf16.xpose.msrb.mxu3 %v453_v35 }
  0xd6   : > { %638 = vmatpush.bf16.msra.mxu2 %v812_v10 }
  0xda   : > { %639 = vmatpush.bf16.msra.mxu2 %v811_v11 }
 0x148   : > { %v470_v37 = vpop.f32.mrf.mxu2  ;;  %v483_v38 = vpop.f32.mrf.mxu3 }
 0x149   : > { %v487_v39 = vmul.f32 0.17677669, %v470_v37  ;;  %v488_v40 = vmul.f32 0.17677669, %v483_v38 }
 0x14b   : > { %v489_v41 = vmax.f32 %v487_v39, %v488_v40 }
 0x14d   : > { %490 = vmax.xlane.f32.xlu2 %v489_v41 }
 0x150   : > { %v472_v42 = vpop.f32.mrf.mxu2  ;;  %v485_v43 = vpop.f32.mrf.mxu3 }
 0x1c0   : > { %v491_v44 = vpop.xlane.xlu2 %490 }
 0x1c1   : > { %v492_v45 = vsub.f32 %v487_v39, %v491_v44  ;;  %v493_v46 = vsub.f32 %v488_v40, %v491_v44 }
 0x1c3   : > { %v494_v47 = vmul.f32 1.442695, %v492_v45  ;;  %v496_v48 = vmul.f32 1.442695, %v493_v46 }
 0x1c5   : > { %860 = vpow2.f32 %v494_v47 }
 0x1c6   : > { %862 = vpow2.f32 %v496_v48 }
 0x1cb   : > { %v861_v49 = vpop.eup %860 }
 0x1cc   : > { %v863_v50 = vpop.eup %862 }
 0x1cd   : > { %v498_v51 = vadd.f32 %v863_v50, %v861_v49 }
 0x1cf   : > { %499 = vadd.xlane.f32.xlu2 %v498_v51 }
 0x242   : > { %v500_v54 = vpop.xlane.xlu2 %499 }
 0x243   : > { %864 = vrcp.f32 %v500_v54 }
 0x249   : > { %v865_v55 = vpop.eup %864 }
 0x24a   : > { %v502_v56 = vmul.f32 %v865_v55, %v861_v49  ;;  %v503_v57 = vmul.f32 %v865_v55, %v863_v50 }
 0x24c   : > { %v504_v58 = vpack.c.bf16 %v502_v56, %v502_v56  ;;  %v505_v59 = vpack.c.bf16 %v503_v57, %v503_v57 }
 0x24e   : > { %514 = vmatmul.bf16.vlgmr.msrb.gmra.mxu2 %v504_v58  ;;  %527 = vmatmul.bf16.vlgmr.msrb.gmra.mxu3 %v505_v59 }
 0x2d1   : > { %v515_v62 = vpop.f32.mrf.mxu2  ;;  %v528_v63 = vpop.f32.mrf.mxu3 }
 0x2d2   : > { %v529_v0 = vadd.f32 %v528_v63, %v515_v62 }
 0x2d4   : > { %v532_v1 = vpack.c.bf16 %v529_v0, %v529_v0 }
 0x2d6   : > { %780 = vmatmul.msk.bf16.vlgmr.msrb.gmra.mxu0 %vm457_vm2, %v532_v1 }
 0x2d9   : > { %v517_v2 = vpop.f32.mrf.mxu2  ;;  %v530_v3 = vpop.f32.mrf.mxu3 }
 0x353   : > { %v565_v5 = vpop.f32.mrf.mxu0 }
 0x354   : > { %v566_v6 = vadd.f32 %v857_v4, %v565_v5 }
 0x356   : > { %v569_v7 = vmax.f32 %v566_v6, 0.0  ;;  %665 = vrot.lane.b32.xlu0 %v566_v6, %s935_s12  ;;  %s755_s12 = sshll.u32 %s350_s11, 3 }
 0x357   : > { %s352_s26 = scalar_lea.vmem [#allocation2], %s755_s12 }
 0x358   : > { %v570_v8 = vpack.c.bf16 %v569_v7, %v569_v7  ;;  %s689_s27 = sshll.u32 %s352_s26, 4  ;;  %s690_s27 = int_to_ptr.vmem [resolvable:$true] %s689_s27 }
 0x35a   : > { %789 = vmatmul.msk.bf16.vlgmr.msrb.gmra.mxu1 %vm457_vm2, %v570_v8 }
 0x35b   : > { %v567_v9 = vpop.f32.mrf.mxu0 }
 0x3c8   : > { %v666_v35 = vpop.permute.xlu0 %665 }
 0x3d7   : > { %v603_v13 = vpop.f32.mrf.mxu1 }
 0x3d8   : > { %v604_v14 = vadd.f32 %v858_v12, %v603_v13 }
 0x3da   : > { %v607_v15 = vmax.f32 %v604_v14, 0.0 }
 0x3dc   : > { %v608_v16 = vpack.c.bf16 %v607_v15, %v607_v15 }
 0x3de   : > { %798 = vmatmul.msk.bf16.vlgmr.msra.gmra.mxu2 %vm457_vm2, %v608_v16 }
 0x3df   : > { %v605_v17 = vpop.f32.mrf.mxu1 }
 0x461   : > { %v641_v19 = vpop.f32.mrf.mxu2 }
 0x462   : > { %v642_v20 = vadd.f32 %v859_v18, %v641_v19 }
 0x464   : > { %v799_v21 = vmul.f32 -1.442695, %v642_v20 }
 0x466   : > { %866 = vpow2.f32 %v799_v21 }
 0x469   : > { %v643_v22 = vpop.f32.mrf.mxu2 }
 0x46c   : > { %v867_v23 = vpop.eup %866 }
 0x46d   : > { %v648_v24 = vadd.f32 1.0, %v867_v23 }
 0x46f   : > { %868 = vrcp.f32 %v648_v24  ;;  %v660_v28 = vand.u32 2147483648, %v648_v24  ;;  %v658_v30 = vand.u32 2147483647, %v648_v24  ;;  %vm654_vm4 = vweird.f32 %v648_v24 }
 0x471   : > { %v661_v32 = vor.u32 1.1754944e-38, %v660_v28  ;;  %vm659_vm6 = vcmp.eq.f32.partialorder %v658_v30, 8.507059e+37 }
 0x475   : > { %v869_v25 = vpop.eup %868 }
 0x476   : > { %v650_v26 = vmul.f32 %v869_v25, %v648_v24  ;;  %vm655_vm3 = vweird.f32 %v869_v25 }
 0x477   : > { %vm656_vm5 = vmor %vm654_vm4, %vm655_vm3 }
 0x478   : > { %v651_v27 = vsub.f32 1.0, %v650_v26 }
 0x47a   : > { %v652_v29 = vmul.f32 %v869_v25, %v651_v27 }
 0x47c   : > { %v653_v31 = vadd.f32 %v869_v25, %v652_v29 }
 0x47e   : > { %v657_v33 = vsel %vm656_vm5, %v869_v25, %v653_v31 }
 0x47f   : > { %v662_v34 = vsel %vm659_vm6, %v661_v32, %v657_v33 }
 0x480   : > { %669 = vrot.lane.b32.xlu1 %v662_v34, %s936_s30  ;;  %s884_s30 = sshra.s32 %s692_s28, 4  ;;  %s885_s30 = int_to_ptr.hbm [resolvable:$true] %s884_s30 }
 0x481   : > { %s886_s17 = scalar_lea.hbm %s885_s30, 8  ;;  %p891_p0 = scmp.lt.s32.totalorder %s885_s30, %s1140_s10 }
 0x482   : > { %p887_p11 = scmp.ne.s32.totalorder %s885_s30, %s886_s17  ;;  %p892_p1 = scmp.lt.s32.totalorder %s890_s20, %s886_s17 }
 0x484   : > { %p888_p12 = pnand %p887_p11, %p1030_p5  ;;  %p893_p2 = por %p892_p1, %p891_p0 }
 0x486   : > { %p889_p13 = pneg %p888_p12 }
 0x488   : > { %p894_p3 = pnand %p893_p2, %p889_p13 }
 0x4f2   : > { %v670_v36 = vpop.permute.xlu1 %669 }
 0x4f3   : > { %v673_v37 = vsel %vm672_vm7, %v666_v35, %v670_v36 }
 0x4f4   : > { %675 = vst.msk [vmem:[%s352_s26] sm:$0xff] %vm674_vm8, %v673_v37 }
 0x4f5   : > { %897 = shalt.err (!%p894_p3)
}
 0x4f6   : > { %813 = dma.vmem_to_hbm [thread:$0]  (%p1030_p5), %s690_s27, 128, %s692_s28, %s677_s29  }
 0x4f7 PF: > { %p819_p4 = scmp.ge.s32.totalorder %s932_s16, 2  ;;  %s703_s11 = sand.u32 1, %s920_s13  }
 0x4f8   : > { %s704_s26 = scalar_lea.sflag [#allocation3], %s703_s11 }
 0x4f9   : > { %p816_p7 = pnand %p819_p4, %p1034_p6 }
 0x4fb   : > { %p817_p8 = pneg %p816_p7 }
 0x4fd   : > { %915 = dma.done.wait (%p817_p8), %s704_s26, 128  }
 0x4fe   : > { %917 = vsyncadd (%p817_p8), %s704_s26, 4294967168  ;;  %p20_p9 = scmp.ge.s32.totalorder %s1017_s19, 4   ;;  %s1143_s13 = smov %s924_s14 }
 0x4ff   : > { %s1144_s14 = smov %s928_s15  ;;  %s1145_s15 = smov %s1028_s22 }
 0x500   : > { %s1146_s16 = smov %s1017_s19  ;;  %22 = sbr.rel (!%p20_p9) target bundleno = 3 (0x3), region = 95 }
 0x505   :  { %710 = vsyncpa [#allocation3], 1 }
 0x506   :  { %712 = vsyncpa [#allocation3 + $0x1], 1 }

</bundles_post_ra>
